<compile_context>
chip_gen: v5e
topology: v5e:2x2
jax: 0.10.0
libtpu: 0.0.40
codegen_flags: <defaults>
</compile_context>

<pallas_src>
import jax
import jax.numpy as jnp
from jax.experimental import pallas as pl
from jax.experimental.pallas import tpu as pltpu

# Small-but-faithful config (module: b=128, c=3, h=w=32, p=4, d=128; only the
# batch is shrunk here so the example runs fast).
B = 8                 # batch (module uses 128)
C = 3                 # channels
H = W = 32            # spatial
P = 4                 # patch size
N = W // P            # patches per side (8)
N2 = N * N            # number of patches (64)
K = P * P * C         # patch feature dim (48)
D = 128               # hidden dim

MATMUL_DTYPE = jnp.bfloat16   # MXU-native on v5e/v6e/v7x; accumulation is f32


def _choose_batches_per_block(batch, n2, target_rows=1024):
    """Pick BPB so the M tile is ~512-2048 rows, divides the batch, and (when
    the batch allows it) keeps an even, >=2-step grid so the parallel axis
    shards cleanly across both v7x TensorCores."""
    bpb = max(1, min(batch, target_rows // n2))
    while batch % bpb:
        bpb -= 1
    steps = batch // bpb
    if steps < 2 and batch >= 2:          # never collapse to a 1-step grid
        bpb = max(1, batch // 2)
        while batch % bpb:
            bpb -= 1
        steps = batch // bpb
    if steps > 1 and steps % 2:           # prefer an even grid length (v7x)
        for cand in range(bpb - 1, 0, -1):
            if batch % cand == 0 and (batch // cand) % 2 == 0:
                bpb = cand
                break
    return bpb


# B=128 -> BPB=16 (1024-row tiles, grid=8);  demo B=8 -> BPB=4 (grid=2).
BPB = _choose_batches_per_block(B, N2)
assert B % BPB == 0, (B, BPB)


def pos_emb_kernel(patch_ref, w_ref, bias_ref, cls_ref, pos_ref, o_ref):
    # patch_ref: (BPB*N2, K)   bf16  M-folded patch rows for BPB batch elements
    # w_ref:     (K, D)        bf16  projection weight (transposed -> x @ W^T)
    # bias_ref:  (1, D)        f32   projection bias
    # cls_ref:   (BPB, 1, D)   f32   x_class rows for this block
    # pos_ref:   (N2+1, D)     f32   positional embedding (row 0 = cls row)
    # o_ref:     (BPB, N2+1, D) f32  output tokens
    bpb, tokens, dd = o_ref.shape
    n2 = tokens - 1

    proj = jnp.dot(patch_ref[...], w_ref[...],
                   preferred_element_type=jnp.float32)          # (bpb*n2, D)
    # bias + patch-row positional embedding, added in-kernel on the VPU
    # (free under the HBM roofline; avoids separate wrapper-side XLA ops).
    pos_patch = bias_ref[...] + pos_ref[pl.ds(1, n2), :]        # (n2, D)
    proj = proj.reshape(bpb, n2, dd) + pos_patch[None, :, :]    # (bpb, n2, D)

    cls_rows = cls_ref[...] + pos_ref[pl.ds(0, 1), :][None, :, :]  # (bpb,1,D)

    # Split stores: no (N2+1)-row concat intermediate. Only the single cls row
    # per batch element is a masked partial store (hidden in the mem-bound
    # regime; revisit only if a v5e bundle dump shows vst-slot saturation).
    o_ref[:, pl.ds(0, 1), :] = cls_rows.astype(o_ref.dtype)
    o_ref[:, pl.ds(1, n2), :] = proj.astype(o_ref.dtype)
    # TODO(synk): nn.Dropout(0.1) is treated as eval-mode identity; train-mode
    # masking would use pltpu.prng_seed / pltpu.prng_random_bits.


@jax.jit
def positional_embedding(x, weight, bias, x_class, pos_emb):
    """x: (B, C, H, W) NCHW -> tokens (B, N2+1, D) float32."""
    # patchify: matches torch view/transpose(3,4)/transpose(1,3)/transpose(1,2)/
    # reshape -> per-patch features ordered (channel, patch_row, patch_col).
    patches = x.reshape(B, C, H // P, P, W // P, P)
    patches = jnp.transpose(patches, (0, 2, 4, 1, 3, 5)).reshape(B * N2, K)
    # Pre-materialized bf16 patches -> one contiguous lane-dense DMA per tile.
    patches = patches.astype(MATMUL_DTYPE)

    w_t = weight.T.astype(MATMUL_DTYPE)                  # (K, D)
    bias2d = bias.reshape(1, D).astype(jnp.float32)      # (1, D)
    pos2d = pos_emb.reshape(N2 + 1, D).astype(jnp.float32)
    cls = x_class.astype(jnp.float32)                    # (B, 1, D)

    grid_spec = pltpu.PrefetchScalarGridSpec(
        num_scalar_prefetch=0,
        grid=(B // BPB,),
        in_specs=[
            pl.BlockSpec((BPB * N2, K), lambda i: (i, 0)),     # patches, M-tiled
            pl.BlockSpec((K, D), lambda i: (0, 0)),            # weight^T, resident
            pl.BlockSpec((1, D), lambda i: (0, 0)),            # bias, resident
            pl.BlockSpec((BPB, 1, D), lambda i: (i, 0, 0)),    # cls tokens
            pl.BlockSpec((N2 + 1, D), lambda i: (0, 0)),       # pos emb, resident
        ],
        out_specs=pl.BlockSpec((BPB, N2 + 1, D), lambda i: (i, 0, 0)),
    )
    return pl.pallas_call(
        pos_emb_kernel,
        out_shape=jax.ShapeDtypeStruct((B, N2 + 1, D), jnp.float32),
        grid_spec=grid_spec,
        compiler_params=pltpu.CompilerParams(
            dimension_semantics=("parallel",),
        ),
    )(patches, w_t, bias2d, cls, pos2d)


def reference(x, weight, bias, x_class, pos_emb):
    """Pure-JAX f32 reference matching the PyTorch forward."""
    patches = x.reshape(B, C, H // P, P, W // P, P)
    patches = jnp.transpose(patches, (0, 2, 4, 1, 3, 5)).reshape(B, N2, K)
    proj = jnp.einsum("bnk,dk->bnd", patches, weight) + bias[None, None, :]
    tokens = jnp.concatenate([x_class, proj], axis=1)
    return tokens + pos_emb


if __name__ == "__main__":
    key = jax.random.PRNGKey(0)
    k_x, k_w, k_b, k_cls, k_pos = jax.random.split(key, 5)

    # Deterministic synthetic parameters (shapes follow the module __init__).
    x = jax.random.normal(k_x, (B, C, H, W), dtype=jnp.float32)
    weight = jax.random.normal(k_w, (D, K), dtype=jnp.float32) * 0.02   # nn.Linear weight (d, p*p*c)
    bias = jax.random.normal(k_b, (D,), dtype=jnp.float32) * 0.02       # nn.Linear bias
    x_class = jax.random.normal(k_cls, (B, 1, D), dtype=jnp.float32)    # self.x_class
    pos_emb = jax.random.normal(k_pos, (1, N2 + 1, D), dtype=jnp.float32)  # self.pos_emb
    # (self.linear_proj, self.cls_token, self.pos_embedding are unused in forward.)

    out = jax.block_until_ready(
        positional_embedding(x, weight, bias, x_class, pos_emb))
    ref = reference(x, weight, bias, x_class, pos_emb)

    assert out.shape == (B, N2 + 1, D), out.shape
    # bf16 matmul operands with f32 accumulation -> loosened tolerance vs the
    # f32 reference.
    max_err = float(jnp.max(jnp.abs(out - ref)))
    assert jnp.allclose(out, ref, atol=2e-2, rtol=2e-2), f"mismatch, max_err={max_err}"
    print("KERNEL_OK")
</pallas_src>

<mosaic_0001>
module attributes {stable_mosaic.version = 11 : i64} {
  func.func @pos_emb_kernel(%arg0: i32, %arg1: memref<256x48xbf16, #tpu.memory_space<vmem>>, %arg2: memref<48x128xbf16, #tpu.memory_space<vmem>>, %arg3: memref<1x128xf32, #tpu.memory_space<vmem>>, %arg4: memref<4x1x128xf32, #tpu.memory_space<vmem>>, %arg5: memref<65x128xf32, #tpu.memory_space<vmem>>, %arg6: memref<4x65x128xf32, #tpu.memory_space<vmem>>) attributes {dimension_semantics = [#tpu.dimension_semantics<parallel>], iteration_bounds = array<i64: 2>, scalar_prefetch = 0 : i64, scratch_operands = 0 : i64, tpu.core_type = #tpu.core_type<tc>, window_params = [{transform_indices = @transform_0, window_bounds = array<i64: 256, 48>}, {pipeline_mode = #tpu.pipeline_mode<synchronous>, transform_indices = @transform_1, window_bounds = array<i64: 48, 128>}, {pipeline_mode = #tpu.pipeline_mode<synchronous>, transform_indices = @transform_2, window_bounds = array<i64: 1, 128>}, {transform_indices = @transform_3, window_bounds = array<i64: 4, 1, 128>}, {pipeline_mode = #tpu.pipeline_mode<synchronous>, transform_indices = @transform_4, window_bounds = array<i64: 65, 128>}, {transform_indices = @transform_5, window_bounds = array<i64: 4, 65, 128>}]} {
    %c0 = arith.constant 0 : index
    %c0_0 = arith.constant 0 : index
    %0 = vector.load %arg1[%c0, %c0_0] : memref<256x48xbf16, #tpu.memory_space<vmem>>, vector<256x48xbf16>
    %c0_1 = arith.constant 0 : index
    %c0_2 = arith.constant 0 : index
    %1 = vector.load %arg2[%c0_1, %c0_2] : memref<48x128xbf16, #tpu.memory_space<vmem>>, vector<48x128xbf16>
    %cst = arith.constant dense<0.000000e+00> : vector<256x128xf32>
    %2 = tpu.matmul %0, %1, %cst {dimension_numbers = #tpu.dot_dimension_numbers<[1], [0], [0], [1], [0, 0, 1, 1], [], []>} : vector<256x48xbf16>, vector<48x128xbf16>, vector<256x128xf32> -> vector<256x128xf32>
    %c0_3 = arith.constant 0 : index
    %c0_4 = arith.constant 0 : index
    %3 = vector.load %arg3[%c0_3, %c0_4] : memref<1x128xf32, #tpu.memory_space<vmem>>, vector<1x128xf32>
    %c1 = arith.constant 1 : index
    %c0_5 = arith.constant 0 : index
    %4 = vector.load %arg5[%c1, %c0_5] : memref<65x128xf32, #tpu.memory_space<vmem>>, vector<64x128xf32>
    %5 = vector.broadcast %3 : vector<1x128xf32> to vector<64x128xf32>
    %6 = arith.addf %5, %4 : vector<64x128xf32>
    %7 = vector.shape_cast %2 : vector<256x128xf32> to vector<4x64x128xf32>
    %8 = vector.shape_cast %6 : vector<64x128xf32> to vector<1x64x128xf32>
    %9 = vector.broadcast %8 : vector<1x64x128xf32> to vector<4x64x128xf32>
    %10 = arith.addf %7, %9 : vector<4x64x128xf32>
    %c0_6 = arith.constant 0 : index
    %c0_7 = arith.constant 0 : index
    %c0_8 = arith.constant 0 : index
    %11 = vector.load %arg4[%c0_6, %c0_7, %c0_8] : memref<4x1x128xf32, #tpu.memory_space<vmem>>, vector<4x1x128xf32>
    %c0_9 = arith.constant 0 : index
    %c0_10 = arith.constant 0 : index
    %12 = vector.load %arg5[%c0_9, %c0_10] : memref<65x128xf32, #tpu.memory_space<vmem>>, vector<1x128xf32>
    %13 = vector.shape_cast %12 : vector<1x128xf32> to vector<1x1x128xf32>
    %14 = vector.broadcast %13 : vector<1x1x128xf32> to vector<4x1x128xf32>
    %15 = arith.addf %11, %14 : vector<4x1x128xf32>
    %c0_11 = arith.constant 0 : index
    %c0_12 = arith.constant 0 : index
    %c0_13 = arith.constant 0 : index
    %16 = vector.load %arg6[%c0_11, %c0_12, %c0_13] : memref<4x65x128xf32, #tpu.memory_space<vmem>>, vector<4x1x128xf32>
    tpu.vector_store %arg6[%c0_11, %c0_12, %c0_13], %15 {strides = array<i32>} : memref<4x65x128xf32, #tpu.memory_space<vmem>>, vector<4x1x128xf32>,
    %c0_14 = arith.constant 0 : index
    %c1_15 = arith.constant 1 : index
    %c0_16 = arith.constant 0 : index
    %17 = vector.load %arg6[%c0_14, %c1_15, %c0_16] : memref<4x65x128xf32, #tpu.memory_space<vmem>>, vector<4x64x128xf32>
    tpu.vector_store %arg6[%c0_14, %c1_15, %c0_16], %10 {strides = array<i32>} : memref<4x65x128xf32, #tpu.memory_space<vmem>>, vector<4x64x128xf32>,
    return
  }
  func.func @transform_0(%arg0: i32) -> (i32, i32) {
    %c0_i32 = arith.constant 0 : i32
    %c0_i32_0 = arith.constant 0 : i32
    return %arg0, %c0_i32 : i32, i32
  }
  func.func @transform_1(%arg0: i32) -> (i32, i32) {
    %c0_i32 = arith.constant 0 : i32
    %c0_i32_0 = arith.constant 0 : i32
    %c0_i32_1 = arith.constant 0 : i32
    return %c0_i32, %c0_i32_0 : i32, i32
  }
  func.func @transform_2(%arg0: i32) -> (i32, i32) {
    %c0_i32 = arith.constant 0 : i32
    %c0_i32_0 = arith.constant 0 : i32
    %c0_i32_1 = arith.constant 0 : i32
    return %c0_i32, %c0_i32_0 : i32, i32
  }
  func.func @transform_3(%arg0: i32) -> (i32, i32, i32) {
    %c0_i32 = arith.constant 0 : i32
    %c0_i32_0 = arith.constant 0 : i32
    %c0_i32_1 = arith.constant 0 : i32
    return %arg0, %c0_i32, %c0_i32_0 : i32, i32, i32
  }
  func.func @transform_4(%arg0: i32) -> (i32, i32) {
    %c0_i32 = arith.constant 0 : i32
    %c0_i32_0 = arith.constant 0 : i32
    %c0_i32_1 = arith.constant 0 : i32
    return %c0_i32, %c0_i32_0 : i32, i32
  }
  func.func @transform_5(%arg0: i32) -> (i32, i32, i32) {
    %c0_i32 = arith.constant 0 : i32
    %c0_i32_0 = arith.constant 0 : i32
    %c0_i32_1 = arith.constant 0 : i32
    return %arg0, %c0_i32, %c0_i32_0 : i32, i32, i32
  }
}

</mosaic_0001>

<bundles_post_ra>
// kernel: positional_embedding.1
= control target key start
LH: loop header
LB: loop body
LE: loop exit
PB: predicated region body
PF: predicated region fallthrough
CT: control target
= control target key end

     0   :  { %s868_s18 = smov 0   ;;  %s1013_s0 = inlined_call_operand.vmem [shape: bf16[512,48], index: 0, kind: input, shape index: {}]   ;;  %s1014_s1 = inlined_call_operand.vmem [shape: bf16[48,128], index: 1, kind: input, shape index: {}]   ;;  %s1015_s2 = inlined_call_operand.vmem [shape: f32[1,128], index: 2, kind: input, shape index: {}]   ;;  %s1016_s3 = inlined_call_operand.vmem [shape: f32[8,1,128], index: 3, kind: input, shape index: {}]   ;;  %s1017_s4 = inlined_call_operand.vmem [shape: f32[65,128], index: 4, kind: input, shape index: {}]   ;;  %s1018_s5 = inlined_call_operand.vmem [shape: f32[8,65,128], index: 5, kind: output, shape index: {}]  }
   0x1 LB: > { %s688_s19 = sadd.s32 4294967295, %s836_s18   ;;  %p692_p0 = scmp.ge.s32.totalorder %s836_s18, 1  ;;  %s836_s18 = sphi %s868_s18, %s15_s18  }
   0x2   : > { %p198_p1 = scmp.lt.s32.totalorder %s836_s18, 3 }
   0x4   : > { %p199_p2 = pnand %p692_p0, %p198_p1 }
   0x5   : > { %s693_s22 = sshll.u32 (!%p199_p2), %s688_s19, 5  ;;  %s695_s6 = sshll.u32 (!%p199_p2), %s688_s19, 2 }
   0x6   : > { %202 = sbr.rel (%p199_p2) target bundleno = 216 (0xd8), region = 40  ;;  %p232_p3 = scmp.lt.s32.totalorder (!%p199_p2), %s693_s22, 63 }
   0x7   : > { %p238_p4 = scmp.lt.s32.totalorder (!%p199_p2), %s695_s6, 7 }
   0xb   : > { %v810_v0 = vld [vmem:[%s1014_s1 + $0x10] sm:$0xff]  ;;  %v809_v1 = vld [vmem:[%s1014_s1 + $0x8] sm:$0xff]  ;;  %s1020_s22 = smov (!%p232_p3, %s693_s22), 63  ;;  %v808_v2 = vld [vmem:[%s1014_s1] sm:$0xff]  ;;  %vm386_vm0 = vcmask 392192   ;;  %s1022_s6 = smov (!%p238_p4, %s695_s6), 7 }
   0xc   : > { %440 = vmatpush.bf16.msra.mxu0 %v810_v0  ;;  %811 = vmatpush.bf16.msra.mxu1 %v810_v0  ;;  %s694_s25 = sshll.u32 %s1020_s22, 2  ;;  %s240_s9 = scalar_lea.vmem %s1016_s3, %s1022_s6  ;;  %v580_v23 = vld [vmem:[%s1017_s4] sm:$0x1]  ;;  %v525_v29 = vld [vmem:[%s1017_s4 + $0x1] sm:$0xff]  ;;  %v526_v35 = vld [vmem:[%s1017_s4 + $0x9] sm:$0xff] }
   0xd   : > { %812 = vmatpush.bf16.msra.mxu2 %v810_v0  ;;  %813 = vmatpush.bf16.msra.mxu3 %v810_v0  ;;  %s890_s30 = scalar_lea.vmem %s1013_s0, %s694_s25  ;;  %s820_s10 = smul.u32 72, %s1022_s6  ;;  %v576_v19 = vld [vmem:[%s240_s9] sm:$0x1]  ;;  %v577_v20 = vld [vmem:[%s240_s9 + $0x1] sm:$0x1]  ;;  %v527_v45 = vld [vmem:[%s1017_s4 + $0x11] sm:$0xff] }
   0xe   : > { %v792_v3 = vld [vmem:[%s890_s30] sm:$0xff]  ;;  %v793_v7 = vld [vmem:[%s890_s30 + $0x8] sm:$0xff]  ;;  %v794_v11 = vld [vmem:[%s890_s30 + $0x10] sm:$0xff]  ;;  %v581_v24 = vadd.f32 %v580_v23, %v576_v19  ;;  %v582_v25 = vadd.f32 %v580_v23, %v577_v20 }
   0xf   : > { %v796_v4 = vld [vmem:[%s890_s30 + $0x20] sm:$0xff]  ;;  %v797_v8 = vld [vmem:[%s890_s30 + $0x28] sm:$0xff]  ;;  %v798_v12 = vld [vmem:[%s890_s30 + $0x30] sm:$0xff]  ;;  %s935_s15 = scalar_lea.vmem %s1018_s5, %s820_s10 }
  0x10   : > { %441 = vmatpush.bf16.msra.mxu0 %v809_v1  ;;  %814 = vmatpush.bf16.msra.mxu1 %v809_v1  ;;  %v800_v5 = vld [vmem:[%s890_s30 + $0x40] sm:$0xff]  ;;  %v801_v9 = vld [vmem:[%s890_s30 + $0x48] sm:$0xff]  ;;  %v802_v13 = vld [vmem:[%s890_s30 + $0x50] sm:$0xff]  ;;  %585 = vst [vmem:[%s935_s15] sm:$0x1] %v581_v24 }
  0x11   : > { %815 = vmatpush.bf16.msra.mxu2 %v809_v1  ;;  %816 = vmatpush.bf16.msra.mxu3 %v809_v1  ;;  %v804_v6 = vld [vmem:[%s890_s30 + $0x60] sm:$0xff]  ;;  %v805_v10 = vld [vmem:[%s890_s30 + $0x68] sm:$0xff]  ;;  %v806_v14 = vld [vmem:[%s890_s30 + $0x70] sm:$0xff]  ;;  %586 = vst [vmem:[%s935_s15 + $0x48] sm:$0x1] %v582_v25 }
  0x12   : > { %v795_v15 = vld [vmem:[%s890_s30 + $0x18] sm:$0xff]  ;;  %v578_v21 = vld [vmem:[%s240_s9 + $0x2] sm:$0x1]  ;;  %v579_v22 = vld [vmem:[%s240_s9 + $0x3] sm:$0x1] }
  0x13   : > { %v799_v16 = vld [vmem:[%s890_s30 + $0x38] sm:$0xff]  ;;  %v583_v26 = vadd.f32 %v580_v23, %v578_v21  ;;  %v584_v27 = vadd.f32 %v580_v23, %v579_v22  ;;  %v944_v28 = vld [vmem:[%s1015_s2] ss:$0 sm:$0xff]  ;;  %v529_v1 = vld [vmem:[%s1017_s4 + $0x21] sm:$0xff] }
  0x14   : > { %442 = vmatpush.bf16.msra.mxu0 %v808_v2  ;;  %817 = vmatpush.bf16.msra.mxu1 %v808_v2  ;;  %v803_v17 = vld [vmem:[%s890_s30 + $0x58] sm:$0xff]  ;;  %v536_v30 = vadd.f32 %v944_v28, %v525_v29  ;;  %v537_v36 = vadd.f32 %v944_v28, %v526_v35  ;;  %v538_v46 = vadd.f32 %v944_v28, %v527_v45 }
  0x15   : > { %818 = vmatpush.bf16.msra.mxu2 %v808_v2  ;;  %819 = vmatpush.bf16.msra.mxu3 %v808_v2  ;;  %v807_v18 = vld [vmem:[%s890_s30 + $0x78] sm:$0xff]  ;;  %587 = vst [vmem:[%s935_s15 + $0x90] sm:$0x1] %v583_v26  ;;  %v540_v2 = vadd.f32 %v944_v28, %v529_v1 }
  0x16   : > { %588 = vst [vmem:[%s935_s15 + $0xd8] sm:$0x1] %v584_v27  ;;  %v528_v55 = vld [vmem:[%s1017_s4 + $0x19] sm:$0xff]  ;;  %v531_v21 = vld [vmem:[%s1017_s4 + $0x31] sm:$0xff] }
  0x17   : > { %774 = vmatmul.msk.bf16.vlgmr.msra.gmra.mxu0 %vm386_vm0, %v792_v3  ;;  %778 = vmatmul.msk.bf16.vlgmr.msra.gmra.mxu1 %vm386_vm0, %v796_v4  ;;  %v539_v56 = vadd.f32 %v944_v28, %v528_v55  ;;  %v542_v22 = vadd.f32 %v944_v28, %v531_v21 }
  0x18   : > { %782 = vmatmul.msk.bf16.vlgmr.msra.gmra.mxu2 %vm386_vm0, %v800_v5  ;;  %786 = vmatmul.msk.bf16.vlgmr.msra.gmra.mxu3 %vm386_vm0, %v804_v6 }
  0x27   : > { %775 = vmatmul.msk.bf16.gmra.mxu0 %vm386_vm0, %v793_v7  ;;  %779 = vmatmul.msk.bf16.gmra.mxu1 %vm386_vm0, %v797_v8 }
  0x28   : > { %783 = vmatmul.msk.bf16.gmra.mxu2 %vm386_vm0, %v801_v9  ;;  %787 = vmatmul.msk.bf16.gmra.mxu3 %vm386_vm0, %v805_v10 }
  0x37   : > { %776 = vmatmul.msk.bf16.gmra.mxu0 %vm386_vm0, %v794_v11  ;;  %780 = vmatmul.msk.bf16.gmra.mxu1 %vm386_vm0, %v798_v12  ;;  %v530_v11 = vld [vmem:[%s1017_s4 + $0x29] sm:$0xff] }
  0x38   : > { %784 = vmatmul.msk.bf16.gmra.mxu2 %vm386_vm0, %v802_v13  ;;  %788 = vmatmul.msk.bf16.gmra.mxu3 %vm386_vm0, %v806_v14  ;;  %v541_v12 = vadd.f32 %v944_v28, %v530_v11 }
  0x47   : > { %777 = vmatmul.msk.bf16.gmra.mxu0 %vm386_vm0, %v795_v15  ;;  %781 = vmatmul.msk.bf16.gmra.mxu1 %vm386_vm0, %v799_v16 }
  0x48   : > { %785 = vmatmul.msk.bf16.gmra.mxu2 %vm386_vm0, %v803_v17  ;;  %789 = vmatmul.msk.bf16.gmra.mxu3 %vm386_vm0, %v807_v18 }
  0x94   : > { %v444_v31 = vpop.f32.mrf.mxu0  ;;  %v464_v32 = vpop.f32.mrf.mxu1 }
  0x95   : > { %v544_v33 = vadd.f32 %v536_v30, %v444_v31  ;;  %v552_v34 = vadd.f32 %v536_v30, %v464_v32  ;;  %v532_v32 = vld [vmem:[%s1017_s4 + $0x39] sm:$0xff] }
  0x97   : > { %589 = vst [vmem:[%s935_s15 + $0x1] sm:$0xff] %v544_v33  ;;  %v543_v33 = vadd.f32 %v944_v28, %v532_v32 }
  0x98   : > { %597 = vst [vmem:[%s935_s15 + $0x49] sm:$0xff] %v552_v34 }
  0x9b   : > { %v484_v37 = vpop.f32.mrf.mxu2  ;;  %v504_v38 = vpop.f32.mrf.mxu3 }
  0x9c   : > { %v560_v39 = vadd.f32 %v536_v30, %v484_v37  ;;  %v568_v40 = vadd.f32 %v536_v30, %v504_v38  ;;  %v446_v41 = vpop.f32.mrf.mxu0  ;;  %v466_v42 = vpop.f32.mrf.mxu1 }
  0x9d   : > { %v545_v43 = vadd.f32 %v537_v36, %v446_v41  ;;  %v553_v44 = vadd.f32 %v537_v36, %v466_v42 }
  0x9e   : > { %605 = vst [vmem:[%s935_s15 + $0x91] sm:$0xff] %v560_v39 }
  0x9f   : > { %613 = vst [vmem:[%s935_s15 + $0xd9] sm:$0xff] %v568_v40 }
  0xa0   : > { %590 = vst [vmem:[%s935_s15 + $0x9] sm:$0xff] %v545_v43 }
  0xa1   : > { %598 = vst [vmem:[%s935_s15 + $0x51] sm:$0xff] %v553_v44 }
  0xa3   : > { %v486_v47 = vpop.f32.mrf.mxu2  ;;  %v506_v48 = vpop.f32.mrf.mxu3 }
  0xa4   : > { %v561_v49 = vadd.f32 %v537_v36, %v486_v47  ;;  %v569_v50 = vadd.f32 %v537_v36, %v506_v48  ;;  %v449_v51 = vpop.f32.mrf.mxu0  ;;  %v469_v52 = vpop.f32.mrf.mxu1 }
  0xa5   : > { %v546_v53 = vadd.f32 %v538_v46, %v449_v51  ;;  %v554_v54 = vadd.f32 %v538_v46, %v469_v52 }
  0xa6   : > { %606 = vst [vmem:[%s935_s15 + $0x99] sm:$0xff] %v561_v49 }
  0xa7   : > { %614 = vst [vmem:[%s935_s15 + $0xe1] sm:$0xff] %v569_v50 }
  0xa8   : > { %591 = vst [vmem:[%s935_s15 + $0x11] sm:$0xff] %v546_v53 }
  0xa9   : > { %599 = vst [vmem:[%s935_s15 + $0x59] sm:$0xff] %v554_v54 }
  0xab   : > { %v489_v57 = vpop.f32.mrf.mxu2  ;;  %v509_v58 = vpop.f32.mrf.mxu3 }
  0xac   : > { %v562_v59 = vadd.f32 %v538_v46, %v489_v57  ;;  %v570_v60 = vadd.f32 %v538_v46, %v509_v58  ;;  %v451_v61 = vpop.f32.mrf.mxu0  ;;  %v471_v62 = vpop.f32.mrf.mxu1 }
  0xad   : > { %v547_v63 = vadd.f32 %v539_v56, %v451_v61  ;;  %v555_v0 = vadd.f32 %v539_v56, %v471_v62 }
  0xae   : > { %607 = vst [vmem:[%s935_s15 + $0xa1] sm:$0xff] %v562_v59 }
  0xaf   : > { %615 = vst [vmem:[%s935_s15 + $0xe9] sm:$0xff] %v570_v60 }
  0xb0   : > { %592 = vst [vmem:[%s935_s15 + $0x19] sm:$0xff] %v547_v63 }
  0xb1   : > { %600 = vst [vmem:[%s935_s15 + $0x61] sm:$0xff] %v555_v0 }
  0xb3   : > { %v491_v3 = vpop.f32.mrf.mxu2  ;;  %v511_v4 = vpop.f32.mrf.mxu3 }
  0xb4   : > { %v563_v5 = vadd.f32 %v539_v56, %v491_v3  ;;  %v571_v6 = vadd.f32 %v539_v56, %v511_v4  ;;  %v454_v7 = vpop.f32.mrf.mxu0  ;;  %v474_v8 = vpop.f32.mrf.mxu1 }
  0xb5   : > { %v548_v9 = vadd.f32 %v540_v2, %v454_v7  ;;  %v556_v10 = vadd.f32 %v540_v2, %v474_v8 }
  0xb6   : > { %608 = vst [vmem:[%s935_s15 + $0xa9] sm:$0xff] %v563_v5 }
  0xb7   : > { %616 = vst [vmem:[%s935_s15 + $0xf1] sm:$0xff] %v571_v6 }
  0xb8   : > { %593 = vst [vmem:[%s935_s15 + $0x21] sm:$0xff] %v548_v9 }
  0xb9   : > { %601 = vst [vmem:[%s935_s15 + $0x69] sm:$0xff] %v556_v10 }
  0xbb   : > { %v494_v13 = vpop.f32.mrf.mxu2  ;;  %v514_v14 = vpop.f32.mrf.mxu3 }
  0xbc   : > { %v564_v15 = vadd.f32 %v540_v2, %v494_v13  ;;  %v572_v16 = vadd.f32 %v540_v2, %v514_v14  ;;  %v456_v17 = vpop.f32.mrf.mxu0  ;;  %v476_v18 = vpop.f32.mrf.mxu1 }
  0xbd   : > { %v549_v19 = vadd.f32 %v541_v12, %v456_v17  ;;  %v557_v20 = vadd.f32 %v541_v12, %v476_v18 }
  0xbe   : > { %609 = vst [vmem:[%s935_s15 + $0xb1] sm:$0xff] %v564_v15 }
  0xbf   : > { %617 = vst [vmem:[%s935_s15 + $0xf9] sm:$0xff] %v572_v16 }
  0xc0   : > { %594 = vst [vmem:[%s935_s15 + $0x29] sm:$0xff] %v549_v19 }
  0xc1   : > { %602 = vst [vmem:[%s935_s15 + $0x71] sm:$0xff] %v557_v20 }
  0xc3   : > { %v496_v23 = vpop.f32.mrf.mxu2  ;;  %v516_v24 = vpop.f32.mrf.mxu3 }
  0xc4   : > { %v565_v25 = vadd.f32 %v541_v12, %v496_v23  ;;  %v573_v26 = vadd.f32 %v541_v12, %v516_v24  ;;  %v459_v27 = vpop.f32.mrf.mxu0  ;;  %v479_v29 = vpop.f32.mrf.mxu1 }
  0xc5   : > { %v550_v30 = vadd.f32 %v542_v22, %v459_v27  ;;  %v558_v31 = vadd.f32 %v542_v22, %v479_v29 }
  0xc6   : > { %610 = vst [vmem:[%s935_s15 + $0xb9] sm:$0xff] %v565_v25 }
  0xc7   : > { %618 = vst [vmem:[%s935_s15 + $0x101] sm:$0xff] %v573_v26 }
  0xc8   : > { %595 = vst [vmem:[%s935_s15 + $0x31] sm:$0xff] %v550_v30 }
  0xc9   : > { %603 = vst [vmem:[%s935_s15 + $0x79] sm:$0xff] %v558_v31 }
  0xcb   : > { %v499_v34 = vpop.f32.mrf.mxu2  ;;  %v519_v35 = vpop.f32.mrf.mxu3 }
  0xcc   : > { %v566_v36 = vadd.f32 %v542_v22, %v499_v34  ;;  %v574_v37 = vadd.f32 %v542_v22, %v519_v35  ;;  %v461_v38 = vpop.f32.mrf.mxu0  ;;  %v481_v39 = vpop.f32.mrf.mxu1 }
  0xcd   : > { %v551_v40 = vadd.f32 %v543_v33, %v461_v38  ;;  %v559_v41 = vadd.f32 %v543_v33, %v481_v39 }
  0xce   : > { %611 = vst [vmem:[%s935_s15 + $0xc1] sm:$0xff] %v566_v36 }
  0xcf   : > { %619 = vst [vmem:[%s935_s15 + $0x109] sm:$0xff] %v574_v37 }
  0xd0   : > { %596 = vst [vmem:[%s935_s15 + $0x39] sm:$0xff] %v551_v40 }
  0xd1   : > { %604 = vst [vmem:[%s935_s15 + $0x81] sm:$0xff] %v559_v41 }
  0xd3   : > { %v501_v42 = vpop.f32.mrf.mxu2  ;;  %v521_v43 = vpop.f32.mrf.mxu3 }
  0xd4   : > { %v567_v44 = vadd.f32 %v543_v33, %v501_v42  ;;  %v575_v45 = vadd.f32 %v543_v33, %v521_v43 }
  0xd6   : > { %612 = vst [vmem:[%s935_s15 + $0xc9] sm:$0xff] %v567_v44 }
  0xd7   : > { %620 = vst [vmem:[%s935_s15 + $0x111] sm:$0xff] %v575_v45 }
  0xd8 PF: > { %s15_s18 = sadd.s32 1, %s836_s18  }
  0xd9   : > { %p12_p5 = scmp.ge.s32.totalorder %s15_s18, 4  }
  0xdb   :  { %14 = sbr.rel (!%p12_p5) target bundleno = 1 (0x1), region = 73 }

</bundles_post_ra>
